<compile_context>
chip_gen: v5e
topology: v5e:2x2
jax: 0.10.0
libtpu: 0.0.40
codegen_flags: <defaults>
</compile_context>

<pallas_src>
import functools
import math

import jax
import jax.numpy as jnp
from jax.experimental import pallas as pl
from jax.experimental.pallas import tpu as pltpu


def _layernorm(x, gamma, beta, eps):
    mean = jnp.mean(x, axis=-1, keepdims=True)
    xc = x - mean
    var = jnp.mean(xc * xc, axis=-1, keepdims=True)
    inv = jax.lax.rsqrt(var + eps)
    return xc * inv * gamma + beta


def _encoder_layer_kernel(
    x_ref,
    wqkv_ref, bqkv_ref,          # packed q/k/v projections for all heads
    wo_ref, bo_ref,              # MHA output projection
    g1_ref, be1_ref,             # LayerNorm 1 (gamma, beta)
    w1_ref, b1_ref,              # FFN linear 1
    w2_ref, b2_ref,              # FFN linear 2
    g2_ref, be2_ref,             # LayerNorm 2 (gamma, beta)
    out_ref,
    *, num_heads, dim_q, dim_k, ln_eps,
):
    x = x_ref[0]                                               # (S, D) f32

    # ---- packed QKV projection: one wide MXU matmul + one bias add -------
    qkv = jnp.dot(x, wqkv_ref[...], preferred_element_type=jnp.float32) + bqkv_ref[...]

    H, dq, dk = num_heads, dim_q, dim_k
    scale = 1.0 / math.sqrt(float(dq))
    q_all = qkv[:, : H * dq] * scale                           # scale folded into q
    k_all = qkv[:, H * dq : H * dq + H * dk]
    v_all = qkv[:, H * dq + H * dk :]

    # ---- per-head scaled dot-product attention ---------------------------
    heads = []
    for h in range(H):                                         # static unroll (H small)
        q = q_all[:, h * dq : (h + 1) * dq]                    # (S, dq)
        k = k_all[:, h * dk : (h + 1) * dk]                    # (S, dk)
        v = v_all[:, h * dk : (h + 1) * dk]                    # (S, dk)

        # contract last dims of q and k -> no explicit transpose of k
        scores = jax.lax.dot_general(
            q, k, dimension_numbers=(((1,), (1,)), ((), ())),
            preferred_element_type=jnp.float32)                # (S, S)

        m = jnp.max(scores, axis=-1, keepdims=True)
        e = jnp.exp(scores - m)
        denom = jnp.sum(e, axis=-1, keepdims=True)
        p = e * pl.reciprocal(denom, approx=True)              # EUP vrcp

        heads.append(jnp.dot(p, v, preferred_element_type=jnp.float32))

    concat = jnp.concatenate(heads, axis=-1)                   # (S, H*dk)

    # ---- output projection + residual + LayerNorm -------------------------
    attn = jnp.dot(concat, wo_ref[...], preferred_element_type=jnp.float32) + bo_ref[...]
    y1 = _layernorm(x + attn, g1_ref[...], be1_ref[...], ln_eps)

    # ---- feed-forward (Linear -> ReLU -> Linear) + residual + LayerNorm ---
    h1 = jnp.dot(y1, w1_ref[...], preferred_element_type=jnp.float32) + b1_ref[...]
    h1 = jnp.maximum(h1, 0.0)
    ff = jnp.dot(h1, w2_ref[...], preferred_element_type=jnp.float32) + b2_ref[...]
    y2 = _layernorm(y1 + ff, g2_ref[...], be2_ref[...], ln_eps)

    out_ref[0] = y2.astype(out_ref.dtype)


def transformer_encoder_layer(src, params, *, num_heads, dim_q, dim_k, ln_eps=1e-5):
    """src: (B, S, dim_model). Returns (B, S, dim_model)."""
    B, S, D = src.shape
    total_qkv = num_heads * (dim_q + 2 * dim_k)
    F = params["w_ff1"].shape[1]
    Hdk = num_heads * dim_k

    kernel = functools.partial(
        _encoder_layer_kernel,
        num_heads=num_heads, dim_q=dim_q, dim_k=dim_k, ln_eps=ln_eps)

    # ---- cost estimate (advisory) ----------------------------------------
    flops_per_batch = (
        2 * S * D * total_qkv                       # packed QKV projection
        + num_heads * 2 * S * S * dim_q             # q k^T
        + num_heads * 2 * S * S * dim_k             # p v
        + 2 * S * Hdk * D                           # output projection
        + 2 * S * D * F + 2 * S * F * D             # FFN
    )
    param_bytes = sum(int(v.size) * 4 for v in params.values())
    cost = pl.CostEstimate(
        flops=int(B * flops_per_batch),
        transcendentals=int(B * (num_heads * S * S + num_heads * S + 2 * S)),
        bytes_accessed=int(2 * B * S * D * 4 + param_bytes),
    )

    def batch_map(b):
        return (b, 0, 0)

    def full2d(b):
        return (0, 0)

    return pl.pallas_call(
        kernel,
        out_shape=jax.ShapeDtypeStruct((B, S, D), jnp.float32),
        grid_spec=pltpu.PrefetchScalarGridSpec(
            num_scalar_prefetch=0,
            grid=(B,),
            in_specs=[
                pl.BlockSpec((1, S, D), batch_map),          # src
                pl.BlockSpec((D, total_qkv), full2d),        # w_qkv (packed)
                pl.BlockSpec((1, total_qkv), full2d),        # b_qkv (packed)
                pl.BlockSpec((Hdk, D), full2d),              # w_o
                pl.BlockSpec((1, D), full2d),                # b_o
                pl.BlockSpec((1, D), full2d),                # ln1 gamma
                pl.BlockSpec((1, D), full2d),                # ln1 beta
                pl.BlockSpec((D, F), full2d),                # w_ff1
                pl.BlockSpec((1, F), full2d),                # b_ff1
                pl.BlockSpec((F, D), full2d),                # w_ff2
                pl.BlockSpec((1, D), full2d),                # b_ff2
                pl.BlockSpec((1, D), full2d),                # ln2 gamma
                pl.BlockSpec((1, D), full2d),                # ln2 beta
            ],
            out_specs=pl.BlockSpec((1, S, D), batch_map),
        ),
        compiler_params=pltpu.CompilerParams(
            dimension_semantics=("parallel",),
        ),
        cost_estimate=cost,
    )(src,
      params["w_qkv"], params["b_qkv"], params["w_o"], params["b_o"],
      params["ln1_g"], params["ln1_b"],
      params["w_ff1"], params["b_ff1"], params["w_ff2"], params["b_ff2"],
      params["ln2_g"], params["ln2_b"])


def init_params(key, dim_model, num_heads, dim_q, dim_k, dim_ff):
    """Deterministic init mimicking torch.nn.Linear (uniform +/- 1/sqrt(fan_in)).

    Per-head q/k/v weights are packed into one (dim_model, H*dq + 2*H*dk) matrix
    (layout: [Wq_0..Wq_{H-1} | Wk_0..Wk_{H-1} | Wv_0..Wv_{H-1}]).
    """
    n_keys = 6 * num_heads + 4
    ks = list(jax.random.split(key, n_keys))

    def u(k, shape, fan_in):
        bound = 1.0 / math.sqrt(float(fan_in))
        return jax.random.uniform(k, shape, jnp.float32, -bound, bound)

    wq, bq, wk, bk, wv, bv = [], [], [], [], [], []
    idx = 0
    for _ in range(num_heads):
        wq.append(u(ks[idx + 0], (dim_model, dim_q), dim_model))
        bq.append(u(ks[idx + 1], (dim_q,), dim_model))
        wk.append(u(ks[idx + 2], (dim_model, dim_k), dim_model))
        bk.append(u(ks[idx + 3], (dim_k,), dim_model))
        wv.append(u(ks[idx + 4], (dim_model, dim_k), dim_model))
        bv.append(u(ks[idx + 5], (dim_k,), dim_model))
        idx += 6

    w_qkv = jnp.concatenate(wq + wk + wv, axis=1)
    b_qkv = jnp.concatenate(bq + bk + bv, axis=0)[None, :]

    return {
        "w_qkv": w_qkv,                                            # (D, H*dq + 2*H*dk)
        "b_qkv": b_qkv,                                            # (1, H*dq + 2*H*dk)
        "w_o": u(ks[idx + 0], (num_heads * dim_k, dim_model), num_heads * dim_k),
        "b_o": u(ks[idx + 1], (1, dim_model), num_heads * dim_k),
        "ln1_g": jnp.ones((1, dim_model), jnp.float32),
        "ln1_b": jnp.zeros((1, dim_model), jnp.float32),
        "w_ff1": u(ks[idx + 2], (dim_model, dim_ff), dim_model),
        "b_ff1": u(ks[idx + 3], (1, dim_ff), dim_model),
        "w_ff2": u(ks[idx + 2], (dim_ff, dim_model), dim_ff),
        "b_ff2": u(ks[idx + 3], (1, dim_model), dim_ff),
        "ln2_g": jnp.ones((1, dim_model), jnp.float32),
        "ln2_b": jnp.zeros((1, dim_model), jnp.float32),
    }


def transformer_encoder_layer_ref(src, params, *, num_heads, dim_q, dim_k, ln_eps=1e-5):
    """Pure-JAX reference mirroring the PyTorch forward (eval mode: dropout=id)."""
    H, dq, dk = num_heads, dim_q, dim_k
    qkv = src @ params["w_qkv"] + params["b_qkv"][0]
    q_all = qkv[..., : H * dq]
    k_all = qkv[..., H * dq : H * dq + H * dk]
    v_all = qkv[..., H * dq + H * dk :]

    heads = []
    for h in range(H):
        q = q_all[..., h * dq : (h + 1) * dq]
        k = k_all[..., h * dk : (h + 1) * dk]
        v = v_all[..., h * dk : (h + 1) * dk]
        scores = jnp.einsum("bqd,bkd->bqk", q, k) / math.sqrt(float(dq))
        p = jax.nn.softmax(scores, axis=-1)
        heads.append(jnp.einsum("bqk,bkd->bqd", p, v))
    concat = jnp.concatenate(heads, axis=-1)
    attn = concat @ params["w_o"] + params["b_o"][0]

    def ln(x, g, b):
        mean = jnp.mean(x, axis=-1, keepdims=True)
        var = jnp.mean((x - mean) ** 2, axis=-1, keepdims=True)
        return (x - mean) / jnp.sqrt(var + ln_eps) * g[0] + b[0]

    y1 = ln(src + attn, params["ln1_g"], params["ln1_b"])
    h1 = jnp.maximum(y1 @ params["w_ff1"] + params["b_ff1"][0], 0.0)
    ff = h1 @ params["w_ff2"] + params["b_ff2"][0]
    return ln(y1 + ff, params["ln2_g"], params["ln2_b"])


if __name__ == "__main__":
    # Small, lane-aligned shapes consistent with the module:
    #   dim_q = dim_k = max(dim_model // num_heads, 1) = 32
    B, S = 2, 8
    dim_model, num_heads, dim_ff = 128, 4, 256
    dim_q = dim_k = max(dim_model // num_heads, 1)

    root = jax.random.PRNGKey(0)
    k_param, k_src = jax.random.split(root, 2)

    params = init_params(k_param, dim_model, num_heads, dim_q, dim_k, dim_ff)
    src = jax.random.normal(k_src, (B, S, dim_model), jnp.float32)

    out = transformer_encoder_layer(src, params, num_heads=num_heads,
                                    dim_q=dim_q, dim_k=dim_k)
    out = jax.block_until_ready(out)

    ref = transformer_encoder_layer_ref(src, params, num_heads=num_heads,
                                        dim_q=dim_q, dim_k=dim_k)
    assert out.shape == (B, S, dim_model), out.shape
    # tolerance loosened for pl.reciprocal(approx=True) in the softmax
    assert jnp.allclose(out, ref, atol=5e-3, rtol=5e-3), float(jnp.max(jnp.abs(out - ref)))

    print("KERNEL_OK")
</pallas_src>

<mosaic_0001>
module attributes {stable_mosaic.version = 11 : i64} {
  func.func @_encoder_layer_kernel(%arg0: i32, %arg1: memref<1x8x128xf32, #tpu.memory_space<vmem>>, %arg2: memref<128x384xf32, #tpu.memory_space<vmem>>, %arg3: memref<1x384xf32, #tpu.memory_space<vmem>>, %arg4: memref<128x128xf32, #tpu.memory_space<vmem>>, %arg5: memref<1x128xf32, #tpu.memory_space<vmem>>, %arg6: memref<1x128xf32, #tpu.memory_space<vmem>>, %arg7: memref<1x128xf32, #tpu.memory_space<vmem>>, %arg8: memref<128x256xf32, #tpu.memory_space<vmem>>, %arg9: memref<1x256xf32, #tpu.memory_space<vmem>>, %arg10: memref<256x128xf32, #tpu.memory_space<vmem>>, %arg11: memref<1x128xf32, #tpu.memory_space<vmem>>, %arg12: memref<1x128xf32, #tpu.memory_space<vmem>>, %arg13: memref<1x128xf32, #tpu.memory_space<vmem>>, %arg14: memref<1x8x128xf32, #tpu.memory_space<vmem>>) attributes {dimension_semantics = [#tpu.dimension_semantics<parallel>], iteration_bounds = array<i64: 2>, scalar_prefetch = 0 : i64, scratch_operands = 0 : i64, tpu.core_type = #tpu.core_type<tc>, window_params = [{transform_indices = @transform_0, window_bounds = array<i64: 1, 8, 128>}, {pipeline_mode = #tpu.pipeline_mode<synchronous>, transform_indices = @transform_1, window_bounds = array<i64: 128, 384>}, {pipeline_mode = #tpu.pipeline_mode<synchronous>, transform_indices = @transform_2, window_bounds = array<i64: 1, 384>}, {pipeline_mode = #tpu.pipeline_mode<synchronous>, transform_indices = @transform_3, window_bounds = array<i64: 128, 128>}, {pipeline_mode = #tpu.pipeline_mode<synchronous>, transform_indices = @transform_4, window_bounds = array<i64: 1, 128>}, {pipeline_mode = #tpu.pipeline_mode<synchronous>, transform_indices = @transform_5, window_bounds = array<i64: 1, 128>}, {pipeline_mode = #tpu.pipeline_mode<synchronous>, transform_indices = @transform_6, window_bounds = array<i64: 1, 128>}, {pipeline_mode = #tpu.pipeline_mode<synchronous>, transform_indices = @transform_7, window_bounds = array<i64: 128, 256>}, {pipeline_mode = #tpu.pipeline_mode<synchronous>, transform_indices = @transform_8, window_bounds = array<i64: 1, 256>}, {pipeline_mode = #tpu.pipeline_mode<synchronous>, transform_indices = @transform_9, window_bounds = array<i64: 256, 128>}, {pipeline_mode = #tpu.pipeline_mode<synchronous>, transform_indices = @transform_10, window_bounds = array<i64: 1, 128>}, {pipeline_mode = #tpu.pipeline_mode<synchronous>, transform_indices = @transform_11, window_bounds = array<i64: 1, 128>}, {pipeline_mode = #tpu.pipeline_mode<synchronous>, transform_indices = @transform_12, window_bounds = array<i64: 1, 128>}, {transform_indices = @transform_13, window_bounds = array<i64: 1, 8, 128>}]} {
    %c0 = arith.constant 0 : index
    %c0_0 = arith.constant 0 : index
    %c0_1 = arith.constant 0 : index
    %0 = vector.load %arg1[%c0, %c0_0, %c0_1] : memref<1x8x128xf32, #tpu.memory_space<vmem>>, vector<1x8x128xf32>
    %1 = vector.shape_cast %0 : vector<1x8x128xf32> to vector<8x128xf32>
    %c0_2 = arith.constant 0 : index
    %c0_3 = arith.constant 0 : index
    %2 = vector.load %arg2[%c0_2, %c0_3] : memref<128x384xf32, #tpu.memory_space<vmem>>, vector<128x384xf32>
    %cst = arith.constant dense<0.000000e+00> : vector<8x384xf32>
    %3 = tpu.matmul %1, %2, %cst {dimension_numbers = #tpu.dot_dimension_numbers<[1], [0], [0], [1], [0, 0, 1, 1], [], []>} : vector<8x128xf32>, vector<128x384xf32>, vector<8x384xf32> -> vector<8x384xf32>
    %c0_4 = arith.constant 0 : index
    %c0_5 = arith.constant 0 : index
    %4 = vector.load %arg3[%c0_4, %c0_5] : memref<1x384xf32, #tpu.memory_space<vmem>>, vector<1x384xf32>
    %5 = vector.broadcast %4 : vector<1x384xf32> to vector<8x384xf32>
    %6 = arith.addf %3, %5 : vector<8x384xf32>
    %7 = vector.extract_strided_slice %6 {offsets = [0, 0], sizes = [8, 128], strides = [1, 1]} : vector<8x384xf32> to vector<8x128xf32>
    %cst_6 = arith.constant 0.176776692 : f32
    %8 = vector.broadcast %cst_6 : f32 to vector<8x128xf32>
    %9 = arith.mulf %7, %8 : vector<8x128xf32>
    %10 = vector.extract_strided_slice %6 {offsets = [0, 128], sizes = [8, 128], strides = [1, 1]} : vector<8x384xf32> to vector<8x128xf32>
    %11 = vector.extract_strided_slice %6 {offsets = [0, 256], sizes = [8, 128], strides = [1, 1]} : vector<8x384xf32> to vector<8x128xf32>
    %12 = vector.extract_strided_slice %9 {offsets = [0, 0], sizes = [8, 32], strides = [1, 1]} : vector<8x128xf32> to vector<8x32xf32>
    %13 = vector.extract_strided_slice %10 {offsets = [0, 0], sizes = [8, 32], strides = [1, 1]} : vector<8x128xf32> to vector<8x32xf32>
    %14 = vector.extract_strided_slice %11 {offsets = [0, 0], sizes = [8, 32], strides = [1, 1]} : vector<8x128xf32> to vector<8x32xf32>
    %cst_7 = arith.constant dense<0.000000e+00> : vector<8x8xf32>
    %15 = tpu.matmul %12, %13, %cst_7 {dimension_numbers = #tpu.dot_dimension_numbers<[1], [1], [0], [0], [0, 0, 1, 0], [], []>} : vector<8x32xf32>, vector<8x32xf32>, vector<8x8xf32> -> vector<8x8xf32>
    %cst_8 = arith.constant dense<0xFF800000> : vector<8xf32>
    %16 = vector.multi_reduction <maximumf>, %15, %cst_8 [1] : vector<8x8xf32> to vector<8xf32>
    %17 = vector.shape_cast %16 : vector<8xf32> to vector<8x1xf32>
    %18 = vector.broadcast %17 : vector<8x1xf32> to vector<8x8xf32>
    %19 = arith.subf %15, %18 : vector<8x8xf32>
    %20 = math.exp %19 : vector<8x8xf32>
    %cst_9 = arith.constant dense<0.000000e+00> : vector<8xf32>
    %21 = vector.multi_reduction <add>, %20, %cst_9 [1] : vector<8x8xf32> to vector<8xf32>
    %22 = vector.shape_cast %21 : vector<8xf32> to vector<8x1xf32>
    %23 = tpu.reciprocal %22 {approx = true} : vector<8x1xf32> -> vector<8x1xf32>
    %24 = vector.broadcast %23 : vector<8x1xf32> to vector<8x8xf32>
    %25 = arith.mulf %20, %24 : vector<8x8xf32>
    %cst_10 = arith.constant dense<0.000000e+00> : vector<8x32xf32>
    %26 = tpu.matmul %25, %14, %cst_10 {dimension_numbers = #tpu.dot_dimension_numbers<[1], [0], [0], [1], [0, 0, 1, 1], [], []>} : vector<8x8xf32>, vector<8x32xf32>, vector<8x32xf32> -> vector<8x32xf32>
    %27 = vector.extract_strided_slice %9 {offsets = [0, 32], sizes = [8, 32], strides = [1, 1]} : vector<8x128xf32> to vector<8x32xf32>
    %28 = vector.extract_strided_slice %10 {offsets = [0, 32], sizes = [8, 32], strides = [1, 1]} : vector<8x128xf32> to vector<8x32xf32>
    %29 = vector.extract_strided_slice %11 {offsets = [0, 32], sizes = [8, 32], strides = [1, 1]} : vector<8x128xf32> to vector<8x32xf32>
    %cst_11 = arith.constant dense<0.000000e+00> : vector<8x8xf32>
    %30 = tpu.matmul %27, %28, %cst_11 {dimension_numbers = #tpu.dot_dimension_numbers<[1], [1], [0], [0], [0, 0, 1, 0], [], []>} : vector<8x32xf32>, vector<8x32xf32>, vector<8x8xf32> -> vector<8x8xf32>
    %cst_12 = arith.constant dense<0xFF800000> : vector<8xf32>
    %31 = vector.multi_reduction <maximumf>, %30, %cst_12 [1] : vector<8x8xf32> to vector<8xf32>
    %32 = vector.shape_cast %31 : vector<8xf32> to vector<8x1xf32>
    %33 = vector.broadcast %32 : vector<8x1xf32> to vector<8x8xf32>
    %34 = arith.subf %30, %33 : vector<8x8xf32>
    %35 = math.exp %34 : vector<8x8xf32>
    %cst_13 = arith.constant dense<0.000000e+00> : vector<8xf32>
    %36 = vector.multi_reduction <add>, %35, %cst_13 [1] : vector<8x8xf32> to vector<8xf32>
    %37 = vector.shape_cast %36 : vector<8xf32> to vector<8x1xf32>
    %38 = tpu.reciprocal %37 {approx = true} : vector<8x1xf32> -> vector<8x1xf32>
    %39 = vector.broadcast %38 : vector<8x1xf32> to vector<8x8xf32>
    %40 = arith.mulf %35, %39 : vector<8x8xf32>
    %cst_14 = arith.constant dense<0.000000e+00> : vector<8x32xf32>
    %41 = tpu.matmul %40, %29, %cst_14 {dimension_numbers = #tpu.dot_dimension_numbers<[1], [0], [0], [1], [0, 0, 1, 1], [], []>} : vector<8x8xf32>, vector<8x32xf32>, vector<8x32xf32> -> vector<8x32xf32>
    %42 = vector.extract_strided_slice %9 {offsets = [0, 64], sizes = [8, 32], strides = [1, 1]} : vector<8x128xf32> to vector<8x32xf32>
    %43 = vector.extract_strided_slice %10 {offsets = [0, 64], sizes = [8, 32], strides = [1, 1]} : vector<8x128xf32> to vector<8x32xf32>
    %44 = vector.extract_strided_slice %11 {offsets = [0, 64], sizes = [8, 32], strides = [1, 1]} : vector<8x128xf32> to vector<8x32xf32>
    %cst_15 = arith.constant dense<0.000000e+00> : vector<8x8xf32>
    %45 = tpu.matmul %42, %43, %cst_15 {dimension_numbers = #tpu.dot_dimension_numbers<[1], [1], [0], [0], [0, 0, 1, 0], [], []>} : vector<8x32xf32>, vector<8x32xf32>, vector<8x8xf32> -> vector<8x8xf32>
    %cst_16 = arith.constant dense<0xFF800000> : vector<8xf32>
    %46 = vector.multi_reduction <maximumf>, %45, %cst_16 [1] : vector<8x8xf32> to vector<8xf32>
    %47 = vector.shape_cast %46 : vector<8xf32> to vector<8x1xf32>
    %48 = vector.broadcast %47 : vector<8x1xf32> to vector<8x8xf32>
    %49 = arith.subf %45, %48 : vector<8x8xf32>
    %50 = math.exp %49 : vector<8x8xf32>
    %cst_17 = arith.constant dense<0.000000e+00> : vector<8xf32>
    %51 = vector.multi_reduction <add>, %50, %cst_17 [1] : vector<8x8xf32> to vector<8xf32>
    %52 = vector.shape_cast %51 : vector<8xf32> to vector<8x1xf32>
    %53 = tpu.reciprocal %52 {approx = true} : vector<8x1xf32> -> vector<8x1xf32>
    %54 = vector.broadcast %53 : vector<8x1xf32> to vector<8x8xf32>
    %55 = arith.mulf %50, %54 : vector<8x8xf32>
    %cst_18 = arith.constant dense<0.000000e+00> : vector<8x32xf32>
    %56 = tpu.matmul %55, %44, %cst_18 {dimension_numbers = #tpu.dot_dimension_numbers<[1], [0], [0], [1], [0, 0, 1, 1], [], []>} : vector<8x8xf32>, vector<8x32xf32>, vector<8x32xf32> -> vector<8x32xf32>
    %57 = vector.extract_strided_slice %9 {offsets = [0, 96], sizes = [8, 32], strides = [1, 1]} : vector<8x128xf32> to vector<8x32xf32>
    %58 = vector.extract_strided_slice %10 {offsets = [0, 96], sizes = [8, 32], strides = [1, 1]} : vector<8x128xf32> to vector<8x32xf32>
    %59 = vector.extract_strided_slice %11 {offsets = [0, 96], sizes = [8, 32], strides = [1, 1]} : vector<8x128xf32> to vector<8x32xf32>
    %cst_19 = arith.constant dense<0.000000e+00> : vector<8x8xf32>
    %60 = tpu.matmul %57, %58, %cst_19 {dimension_numbers = #tpu.dot_dimension_numbers<[1], [1], [0], [0], [0, 0, 1, 0], [], []>} : vector<8x32xf32>, vector<8x32xf32>, vector<8x8xf32> -> vector<8x8xf32>
    %cst_20 = arith.constant dense<0xFF800000> : vector<8xf32>
    %61 = vector.multi_reduction <maximumf>, %60, %cst_20 [1] : vector<8x8xf32> to vector<8xf32>
    %62 = vector.shape_cast %61 : vector<8xf32> to vector<8x1xf32>
    %63 = vector.broadcast %62 : vector<8x1xf32> to vector<8x8xf32>
    %64 = arith.subf %60, %63 : vector<8x8xf32>
    %65 = math.exp %64 : vector<8x8xf32>
    %cst_21 = arith.constant dense<0.000000e+00> : vector<8xf32>
    %66 = vector.multi_reduction <add>, %65, %cst_21 [1] : vector<8x8xf32> to vector<8xf32>
    %67 = vector.shape_cast %66 : vector<8xf32> to vector<8x1xf32>
    %68 = tpu.reciprocal %67 {approx = true} : vector<8x1xf32> -> vector<8x1xf32>
    %69 = vector.broadcast %68 : vector<8x1xf32> to vector<8x8xf32>
    %70 = arith.mulf %65, %69 : vector<8x8xf32>
    %cst_22 = arith.constant dense<0.000000e+00> : vector<8x32xf32>
    %71 = tpu.matmul %70, %59, %cst_22 {dimension_numbers = #tpu.dot_dimension_numbers<[1], [0], [0], [1], [0, 0, 1, 1], [], []>} : vector<8x8xf32>, vector<8x32xf32>, vector<8x32xf32> -> vector<8x32xf32>
    %72 = tpu.concatenate %26, %41, %56, %71 in 1 : vector<8x32xf32>, vector<8x32xf32>, vector<8x32xf32>, vector<8x32xf32> -> vector<8x128xf32>
    %c0_23 = arith.constant 0 : index
    %c0_24 = arith.constant 0 : index
    %73 = vector.load %arg4[%c0_23, %c0_24] : memref<128x128xf32, #tpu.memory_space<vmem>>, vector<128x128xf32>
    %cst_25 = arith.constant dense<0.000000e+00> : vector<8x128xf32>
    %74 = tpu.matmul %72, %73, %cst_25 {dimension_numbers = #tpu.dot_dimension_numbers<[1], [0], [0], [1], [0, 0, 1, 1], [], []>} : vector<8x128xf32>, vector<128x128xf32>, vector<8x128xf32> -> vector<8x128xf32>
    %c0_26 = arith.constant 0 : index
    %c0_27 = arith.constant 0 : index
    %75 = vector.load %arg5[%c0_26, %c0_27] : memref<1x128xf32, #tpu.memory_space<vmem>>, vector<1x128xf32>
    %76 = vector.broadcast %75 : vector<1x128xf32> to vector<8x128xf32>
    %77 = arith.addf %74, %76 : vector<8x128xf32>
    %78 = arith.addf %1, %77 : vector<8x128xf32>
    %c0_28 = arith.constant 0 : index
    %c0_29 = arith.constant 0 : index
    %79 = vector.load %arg6[%c0_28, %c0_29] : memref<1x128xf32, #tpu.memory_space<vmem>>, vector<1x128xf32>
    %c0_30 = arith.constant 0 : index
    %c0_31 = arith.constant 0 : index
    %80 = vector.load %arg7[%c0_30, %c0_31] : memref<1x128xf32, #tpu.memory_space<vmem>>, vector<1x128xf32>
    %cst_32 = arith.constant dense<0.000000e+00> : vector<8xf32>
    %81 = vector.multi_reduction <add>, %78, %cst_32 [1] : vector<8x128xf32> to vector<8xf32>
    %82 = vector.shape_cast %81 : vector<8xf32> to vector<8x1xf32>
    %cst_33 = arith.constant 1.280000e+02 : f32
    %83 = vector.broadcast %cst_33 : f32 to vector<8x1xf32>
    %84 = arith.divf %82, %83 : vector<8x1xf32>
    %85 = vector.broadcast %84 : vector<8x1xf32> to vector<8x128xf32>
    %86 = arith.subf %78, %85 : vector<8x128xf32>
    %87 = arith.mulf %86, %86 : vector<8x128xf32>
    %cst_34 = arith.constant dense<0.000000e+00> : vector<8xf32>
    %88 = vector.multi_reduction <add>, %87, %cst_34 [1] : vector<8x128xf32> to vector<8xf32>
    %89 = vector.shape_cast %88 : vector<8xf32> to vector<8x1xf32>
    %cst_35 = arith.constant 1.280000e+02 : f32
    %90 = vector.broadcast %cst_35 : f32 to vector<8x1xf32>
    %91 = arith.divf %89, %90 : vector<8x1xf32>
    %cst_36 = arith.constant 9.99999974E-6 : f32
    %92 = vector.broadcast %cst_36 : f32 to vector<8x1xf32>
    %93 = arith.addf %91, %92 : vector<8x1xf32>
    %94 = math.rsqrt %93 : vector<8x1xf32>
    %95 = vector.broadcast %94 : vector<8x1xf32> to vector<8x128xf32>
    %96 = arith.mulf %86, %95 : vector<8x128xf32>
    %97 = vector.broadcast %79 : vector<1x128xf32> to vector<8x128xf32>
    %98 = arith.mulf %96, %97 : vector<8x128xf32>
    %99 = vector.broadcast %80 : vector<1x128xf32> to vector<8x128xf32>
    %100 = arith.addf %98, %99 : vector<8x128xf32>
    %c0_37 = arith.constant 0 : index
    %c0_38 = arith.constant 0 : index
    %101 = vector.load %arg8[%c0_37, %c0_38] : memref<128x256xf32, #tpu.memory_space<vmem>>, vector<128x256xf32>
    %cst_39 = arith.constant dense<0.000000e+00> : vector<8x256xf32>
    %102 = tpu.matmul %100, %101, %cst_39 {dimension_numbers = #tpu.dot_dimension_numbers<[1], [0], [0], [1], [0, 0, 1, 1], [], []>} : vector<8x128xf32>, vector<128x256xf32>, vector<8x256xf32> -> vector<8x256xf32>
    %c0_40 = arith.constant 0 : index
    %c0_41 = arith.constant 0 : index
    %103 = vector.load %arg9[%c0_40, %c0_41] : memref<1x256xf32, #tpu.memory_space<vmem>>, vector<1x256xf32>
    %104 = vector.broadcast %103 : vector<1x256xf32> to vector<8x256xf32>
    %105 = arith.addf %102, %104 : vector<8x256xf32>
    %cst_42 = arith.constant 0.000000e+00 : f32
    %106 = vector.broadcast %cst_42 : f32 to vector<8x256xf32>
    %107 = arith.maximumf %105, %106 : vector<8x256xf32>
    %c0_43 = arith.constant 0 : index
    %c0_44 = arith.constant 0 : index
    %108 = vector.load %arg10[%c0_43, %c0_44] : memref<256x128xf32, #tpu.memory_space<vmem>>, vector<256x128xf32>
    %cst_45 = arith.constant dense<0.000000e+00> : vector<8x128xf32>
    %109 = tpu.matmul %107, %108, %cst_45 {dimension_numbers = #tpu.dot_dimension_numbers<[1], [0], [0], [1], [0, 0, 1, 1], [], []>} : vector<8x256xf32>, vector<256x128xf32>, vector<8x128xf32> -> vector<8x128xf32>
    %c0_46 = arith.constant 0 : index
    %c0_47 = arith.constant 0 : index
    %110 = vector.load %arg11[%c0_46, %c0_47] : memref<1x128xf32, #tpu.memory_space<vmem>>, vector<1x128xf32>
    %111 = vector.broadcast %110 : vector<1x128xf32> to vector<8x128xf32>
    %112 = arith.addf %109, %111 : vector<8x128xf32>
    %113 = arith.addf %100, %112 : vector<8x128xf32>
    %c0_48 = arith.constant 0 : index
    %c0_49 = arith.constant 0 : index
    %114 = vector.load %arg12[%c0_48, %c0_49] : memref<1x128xf32, #tpu.memory_space<vmem>>, vector<1x128xf32>
    %c0_50 = arith.constant 0 : index
    %c0_51 = arith.constant 0 : index
    %115 = vector.load %arg13[%c0_50, %c0_51] : memref<1x128xf32, #tpu.memory_space<vmem>>, vector<1x128xf32>
    %cst_52 = arith.constant dense<0.000000e+00> : vector<8xf32>
    %116 = vector.multi_reduction <add>, %113, %cst_52 [1] : vector<8x128xf32> to vector<8xf32>
    %117 = vector.shape_cast %116 : vector<8xf32> to vector<8x1xf32>
    %cst_53 = arith.constant 1.280000e+02 : f32
    %118 = vector.broadcast %cst_53 : f32 to vector<8x1xf32>
    %119 = arith.divf %117, %118 : vector<8x1xf32>
    %120 = vector.broadcast %119 : vector<8x1xf32> to vector<8x128xf32>
    %121 = arith.subf %113, %120 : vector<8x128xf32>
    %122 = arith.mulf %121, %121 : vector<8x128xf32>
    %cst_54 = arith.constant dense<0.000000e+00> : vector<8xf32>
    %123 = vector.multi_reduction <add>, %122, %cst_54 [1] : vector<8x128xf32> to vector<8xf32>
    %124 = vector.shape_cast %123 : vector<8xf32> to vector<8x1xf32>
    %cst_55 = arith.constant 1.280000e+02 : f32
    %125 = vector.broadcast %cst_55 : f32 to vector<8x1xf32>
    %126 = arith.divf %124, %125 : vector<8x1xf32>
    %cst_56 = arith.constant 9.99999974E-6 : f32
    %127 = vector.broadcast %cst_56 : f32 to vector<8x1xf32>
    %128 = arith.addf %126, %127 : vector<8x1xf32>
    %129 = math.rsqrt %128 : vector<8x1xf32>
    %130 = vector.broadcast %129 : vector<8x1xf32> to vector<8x128xf32>
    %131 = arith.mulf %121, %130 : vector<8x128xf32>
    %132 = vector.broadcast %114 : vector<1x128xf32> to vector<8x128xf32>
    %133 = arith.mulf %131, %132 : vector<8x128xf32>
    %134 = vector.broadcast %115 : vector<1x128xf32> to vector<8x128xf32>
    %135 = arith.addf %133, %134 : vector<8x128xf32>
    %c0_57 = arith.constant 0 : index
    %c0_58 = arith.constant 0 : index
    %c0_59 = arith.constant 0 : index
    %136 = vector.load %arg14[%c0_57, %c0_58, %c0_59] : memref<1x8x128xf32, #tpu.memory_space<vmem>>, vector<1x8x128xf32>
    %137 = vector.shape_cast %136 : vector<1x8x128xf32> to vector<8x128xf32>
    %138 = vector.shape_cast %135 : vector<8x128xf32> to vector<1x8x128xf32>
    tpu.vector_store %arg14[%c0_57, %c0_58, %c0_59], %138 {strides = array<i32>} : memref<1x8x128xf32, #tpu.memory_space<vmem>>, vector<1x8x128xf32>,
    return
  }
  func.func @transform_0(%arg0: i32) -> (i32, i32, i32) {
    %c0_i32 = arith.constant 0 : i32
    %c0_i32_0 = arith.constant 0 : i32
    %c0_i32_1 = arith.constant 0 : i32
    return %arg0, %c0_i32, %c0_i32_0 : i32, i32, i32
  }
  func.func @transform_1(%arg0: i32) -> (i32, i32) {
    %c0_i32 = arith.constant 0 : i32
    %c0_i32_0 = arith.constant 0 : i32
    %c0_i32_1 = arith.constant 0 : i32
    return %c0_i32, %c0_i32_0 : i32, i32
  }
  func.func @transform_2(%arg0: i32) -> (i32, i32) {
    %c0_i32 = arith.constant 0 : i32
    %c0_i32_0 = arith.constant 0 : i32
    %c0_i32_1 = arith.constant 0 : i32
    return %c0_i32, %c0_i32_0 : i32, i32
  }
  func.func @transform_3(%arg0: i32) -> (i32, i32) {
    %c0_i32 = arith.constant 0 : i32
    %c0_i32_0 = arith.constant 0 : i32
    %c0_i32_1 = arith.constant 0 : i32
    return %c0_i32, %c0_i32_0 : i32, i32
  }
  func.func @transform_4(%arg0: i32) -> (i32, i32) {
    %c0_i32 = arith.constant 0 : i32
    %c0_i32_0 = arith.constant 0 : i32
    %c0_i32_1 = arith.constant 0 : i32
    return %c0_i32, %c0_i32_0 : i32, i32
  }
  func.func @transform_5(%arg0: i32) -> (i32, i32) {
    %c0_i32 = arith.constant 0 : i32
    %c0_i32_0 = arith.constant 0 : i32
    %c0_i32_1 = arith.constant 0 : i32
    return %c0_i32, %c0_i32_0 : i32, i32
  }
  func.func @transform_6(%arg0: i32) -> (i32, i32) {
    %c0_i32 = arith.constant 0 : i32
    %c0_i32_0 = arith.constant 0 : i32
    %c0_i32_1 = arith.constant 0 : i32
    return %c0_i32, %c0_i32_0 : i32, i32
  }
  func.func @transform_7(%arg0: i32) -> (i32, i32) {
    %c0_i32 = arith.constant 0 : i32
    %c0_i32_0 = arith.constant 0 : i32
    %c0_i32_1 = arith.constant 0 : i32
    return %c0_i32, %c0_i32_0 : i32, i32
  }
  func.func @transform_8(%arg0: i32) -> (i32, i32) {
    %c0_i32 = arith.constant 0 : i32
    %c0_i32_0 = arith.constant 0 : i32
    %c0_i32_1 = arith.constant 0 : i32
    return %c0_i32, %c0_i32_0 : i32, i32
  }
  func.func @transform_9(%arg0: i32) -> (i32, i32) {
    %c0_i32 = arith.constant 0 : i32
    %c0_i32_0 = arith.constant 0 : i32
    %c0_i32_1 = arith.constant 0 : i32
    return %c0_i32, %c0_i32_0 : i32, i32
  }
  func.func @transform_10(%arg0: i32) -> (i32, i32) {
    %c0_i32 = arith.constant 0 : i32
    %c0_i32_0 = arith.constant 0 : i32
    %c0_i32_1 = arith.constant 0 : i32
    return %c0_i32, %c0_i32_0 : i32, i32
  }
  func.func @transform_11(%arg0: i32) -> (i32, i32) {
    %c0_i32 = arith.constant 0 : i32
    %c0_i32_0 = arith.constant 0 : i32
    %c0_i32_1 = arith.constant 0 : i32
    return %c0_i32, %c0_i32_0 : i32, i32
  }
  func.func @transform_12(%arg0: i32) -> (i32, i32) {
    %c0_i32 = arith.constant 0 : i32
    %c0_i32_0 = arith.constant 0 : i32
    %c0_i32_1 = arith.constant 0 : i32
    return %c0_i32, %c0_i32_0 : i32, i32
  }
  func.func @transform_13(%arg0: i32) -> (i32, i32, i32) {
    %c0_i32 = arith.constant 0 : i32
    %c0_i32_0 = arith.constant 0 : i32
    %c0_i32_1 = arith.constant 0 : i32
    return %arg0, %c0_i32, %c0_i32_0 : i32, i32, i32
  }
}

</mosaic_0001>

<bundles_post_ra>
// kernel: tpu_custom_call.1
= control target key start
LH: loop header
LB: loop body
LE: loop exit
PB: predicated region body
PF: predicated region fallthrough
CT: control target
= control target key end

     0   :  { %s2100_s0 = inlined_call_operand.hbm [shape: f32[2,8,128], index: 0, kind: input, shape index: {}]   ;;  %s2101_s1 = inlined_call_operand.hbm [shape: f32[128,384], index: 1, kind: input, shape index: {}]   ;;  %s2102_s2 = inlined_call_operand.hbm [shape: f32[1,384], index: 2, kind: input, shape index: {}]   ;;  %s2103_s3 = inlined_call_operand.hbm [shape: f32[128,128], index: 3, kind: input, shape index: {}]   ;;  %s2104_s4 = inlined_call_operand.vmem [shape: f32[1,128], index: 4, kind: input, shape index: {}]   ;;  %s2105_s5 = inlined_call_operand.vmem [shape: f32[1,128], index: 5, kind: input, shape index: {}]   ;;  %s2106_s6 = inlined_call_operand.vmem [shape: f32[1,128], index: 6, kind: input, shape index: {}]   ;;  %s2107_s7 = inlined_call_operand.hbm [shape: f32[128,256], index: 7, kind: input, shape index: {}]   ;;  %s2108_s8 = inlined_call_operand.vmem [shape: f32[1,256], index: 8, kind: input, shape index: {}]   ;;  %s2109_s9 = inlined_call_operand.hbm [shape: f32[256,128], index: 9, kind: input, shape index: {}]   ;;  %s2110_s10 = inlined_call_operand.vmem [shape: f32[1,128], index: 10, kind: input, shape index: {}]   ;;  %s2111_s11 = inlined_call_operand.vmem [shape: f32[1,128], index: 11, kind: input, shape index: {}]   ;;  %s2112_s12 = inlined_call_operand.vmem [shape: f32[1,128], index: 12, kind: input, shape index: {}]   ;;  %s2113_s13 = inlined_call_operand.hbm [shape: f32[2,8,128], index: 13, kind: output, shape index: {}]  }
   0x1   :  { %2115 = sst [smem:[#allocation19_spill]] %s2101_s1 }
   0x2   :  { %2116 = sst [smem:[#allocation20_spill]] %s2102_s2 }
   0x3   :  { %2117 = sst [smem:[#allocation21_spill]] %s2103_s3 }
   0x4   :  { %2118 = sst [smem:[#allocation22_spill]] %s2107_s7 }
   0x5   :  { %2119 = sst [smem:[#allocation23_spill]] %s2111_s11 }
   0x6   :  { %2120 = sst [smem:[#allocation24_spill]] %s2112_s12 }
   0x7   :  { %2121 = sst [smem:[#allocation25_spill]] %s2113_s13 }
   0x8   :  { %18 = vsyncpa [#allocation3], 0 }
   0x9   :  { %20 = vsyncpa [#allocation3 + $0x1], 0 }
   0xa   :  { %21 = vsyncpa [#allocation6], 0 }
   0xb   :  { %22 = vsyncpa [#allocation9], 0 }
   0xc   :  { %23 = vsyncpa [#allocation12], 0 }
   0xd   :  { %24 = vsyncpa [#allocation4], 0 }
   0xe   :  { %26 = vsyncpa [#allocation4 + $0x1], 0  ;;  %s1846_s25 = smov 0   ;;  %s1848_s26 = smov 0  }
   0xf   :  { %s1850_s27 = smov 0   ;;  %s1852_s28 = smov 0  }
  0x10 LB: > { %s2122_s1 = sld [smem:[#allocation19_spill]]  ;;  %s1870_s15 = sadd.s32 4294967295, %s1759_s28   ;;  %s1759_s28 = sphi %s1852_s28, %s2139_s28   ;;  %s1755_s27 = sphi %s1850_s27, %s2138_s27   ;;  %s1751_s26 = sphi %s1848_s26, %s2137_s26   ;;  %s1747_s25 = sphi %s1846_s25, %s2136_s25  }
  0x11   : > { %p1333_p0 = scmp.ge.s32.totalorder %s1759_s28, 1  ;;  %p53_p1 = scmp.eq.s32.totalorder %s1870_s15, 0 }
  0x12   : > { %p341_p2 = scmp.lt.s32.totalorder %s1759_s28, 3  ;;  %s1761_s17 = smov [#allocation5]  }
  0x13   : > { %s354_s18 = sshll.u32 %s1761_s17, 4  ;;  %s2124_s3 = sld [smem:[#allocation21_spill]]  ;;  %s355_s18 = int_to_ptr.vmem [resolvable:$true] %s354_s18 }
  0x14   : > { %p1875_p3 = pnand %p1333_p0, %p341_p2  ;;  %s1762_s23 = smov [#allocation8]  }
  0x15   : > { %s380_s24 = sshll.u32 %s1762_s23, 4  ;;  %s1763_s29 = smov 384   ;;  %s381_s24 = int_to_ptr.vmem [resolvable:$true] %s380_s24 }
  0x16   : > { %s352_s14 = sshll.u32 %s2122_s1, 4  ;;  %p1390_p4 = pneg %p1875_p3  ;;  %s353_s14 = int_to_ptr.hbm [resolvable:$true] %s352_s14 }
  0x17   : > { %s1764_s30 = smov 24   ;;  %s1765_s17 = smov 128  }
  0x18   : > { %p1887_p6 = pnand %p1390_p4, %p53_p1  ;;  %s1766_s19 = smov 8  }
  0x19   : > { %s378_s21 = sshll.u32 %s2124_s3, 4  ;;  %s2126_s2 = sld [smem:[#allocation20_spill]]  ;;  %s379_s21 = int_to_ptr.hbm [resolvable:$true] %s378_s21 }
  0x1a   : > { %1393 = dma.hbm_to_vmem [thread:$0]  (!%p1887_p6), %s353_s14, 6144, %s355_s18, [#allocation6], %s1763_s29, %s1763_s29, %s1764_s30  }
  0x1b   : > { %1399 = dma.hbm_to_vmem [thread:$0]  (!%p1887_p6), %s379_s21, 2048, %s381_s24, [#allocation9], %s1765_s17, %s1765_s17, %s1766_s19  }
  0x1c   : > { %s1767_s12 = smov [#allocation7]   ;;  %s2127_s7 = sld [smem:[#allocation22_spill]] }
  0x1d   : > { %s369_s13 = sshll.u32 %s1767_s12, 4  ;;  %s1768_s18 = smov [#allocation10]   ;;  %s370_s13 = int_to_ptr.vmem [resolvable:$true] %s369_s13 }
  0x1e   : > { %s403_s1 = sshll.u32 %s1768_s18, 4  ;;  %s1769_s12 = smov 256   ;;  %s404_s1 = int_to_ptr.vmem [resolvable:$true] %s403_s1 }
  0x1f   : > { %s367_s3 = sshll.u32 %s2126_s2, 4  ;;  %s1770_s21 = smov 16   ;;  %s368_s3 = int_to_ptr.hbm [resolvable:$true] %s367_s3 }
  0x20   : > { %1396 = dma.hbm_to_vmem [thread:$0]  (!%p1887_p6), %s368_s3, 48, %s370_s13, [#allocation6]  }
  0x21   : > { %s418_s3 = sshll.u32 %s2109_s9, 4  ;;  %s1771_s13 = smov [#allocation11]   ;;  %s419_s3 = int_to_ptr.hbm [resolvable:$true] %s418_s3 }
  0x22   : > { %s401_s14 = sshll.u32 %s2127_s7, 4  ;;  %s420_s29 = sshll.u32 %s1771_s13, 4  ;;  %s402_s14 = int_to_ptr.hbm [resolvable:$true] %s401_s14  ;;  %s421_s29 = int_to_ptr.vmem [resolvable:$true] %s420_s29 }
  0x23   : > { %1402 = dma.hbm_to_vmem [thread:$0]  (!%p1887_p6), %s402_s14, 4096, %s404_s1, [#allocation9], %s1769_s12, %s1769_s12, %s1770_s21  }
  0x24   : > { %1405 = dma.hbm_to_vmem [thread:$0]  (!%p1887_p6), %s419_s3, 4096, %s421_s29, [#allocation12], %s1765_s17, %s1765_s17, %s1766_s19  }
  0x25   : > { %s1332_s30 = sadd.s32 4294967294, %s1759_s28   ;;  %s1912_s20 = sadd.s32 1, %s1759_s28  }
  0x26   : > { %s39_s23 = sadd.s32 1, %s1755_s27  ;;  %s36_s14 = ssub.s32 %s1759_s28, %s1912_s20 }
  0x27   : > { %p46_p7 = scmp.ne.s32.totalorder %s1755_s27, %s1751_s26  ;;  %p37_p8 = scmp.eq.s32.totalorder %s36_s14, 0 }
  0x28   : > { %p47_p9 = scmp.eq.s32.totalorder %s1759_s28, 0  ;;  %p52_p10 = scmp.ne.s32.totalorder %s1751_s26, %s1747_s25 }
  0x29   : > { %p328_p11 = scmp.eq.s32.totalorder %s1870_s15, 1  ;;  %p334_p0 = scmp.eq.s32.totalorder %s1332_s30, 1 }
  0x2a   : > { %s1924_s18 = scalar_select %p37_p8, %s1755_s27, %s39_s23  }
  0x2b   : > { %p1928_p12 = por %p53_p1, %p52_p10  ;;  %p1932_p13 = por %p328_p11, %p46_p7 }
  0x2c   : > { %p48_p2 = por %p47_p9, %p46_p7  ;;  %s443_s19 = sand.u32 1, %s1755_s27  }
  0x2d   : > { %p1937_p4 = por %p334_p0, %p52_p10  ;;  %p1419_p6 = scmp.lt.s32.totalorder %s1759_s28, 2 }
  0x2e   : > { %s1340_s12 = sshll.u32 %s443_s19, 3  ;;  %s1341_s21 = sshll.u32 %s1759_s28, 3 }
  0x2f   : > { %s451_s3 = scalar_lea.hbm %s2100_s0, %s1341_s21  ;;  %s447_s29 = scalar_lea.vmem [#allocation2], %s1340_s12 }
  0x30   : > { %s453_s13 = sshll.u32 %s451_s3, 4  ;;  %s455_s23 = sshll.u32 %s447_s29, 4  ;;  %s454_s13 = int_to_ptr.hbm [resolvable:$true] %s453_s13  ;;  %s456_s23 = int_to_ptr.vmem [resolvable:$true] %s455_s23 }
  0x31   : > { %p1946_p8 = pnand %p1419_p6, %p48_p2  ;;  %s444_s14 = scalar_lea.sflag [#allocation3], %s443_s19 }
  0x32   : > { %s1651_s2 = sshra.s32 %s454_s13, 4  ;;  %s1658_s12 = scalar_lea.hbm %s2100_s0, 16  ;;  %s1652_s2 = int_to_ptr.hbm [resolvable:$true] %s1651_s2 }
  0x33   : > { %s1653_s7 = scalar_lea.hbm %s1652_s2, 8  ;;  %p1655_p9 = pneg %p1946_p8 }
  0x34   : > { %p1654_p7 = scmp.ne.s32.totalorder %s1652_s2, %s1653_s7  ;;  %p1659_p0 = scmp.lt.s32.totalorder %s1652_s2, %s2100_s0 }
  0x35   : > { %p1660_p2 = scmp.lt.s32.totalorder %s1658_s12, %s1653_s7 }
  0x36   : > { %p1656_p10 = pnand %p1655_p9, %p1654_p7 }
  0x37   : > { %p1661_p6 = por %p1660_p2, %p1659_p0 }
  0x38   : > { %p1657_p11 = pneg %p1656_p10 }
  0x3a   : > { %p1662_p5 = pnand %p1661_p6, %p1657_p11 }
  0x3c   : > { %1665 = shalt.err (!%p1662_p5)
}
  0x3d   : > { %1409 = dma.hbm_to_vmem [thread:$0]  (!%p1946_p8), %s454_s13, 128, %s456_s23, %s444_s14  }
  0x3e   : > { %464 = sbr.rel (%p1875_p3) target bundleno = 2327 (0x917), region = 72  ;;  %s1963_s19 = sand.u32 (!%p1875_p3), 1, %s1751_s26  }
  0x3f   : > { %s1343_s29 = sshll.u32 (!%p1875_p3), %s1963_s19, 3  ;;  %s467_s21 = scalar_lea.sflag (!%p1875_p3), [#allocation3], %s1963_s19 }
  0x40   : > { %s1969_s2 = scalar_lea.vmem (!%p1875_p3), [#allocation2], %s1343_s29 }
  0x43   : > { %1726 = dma.done.wait (%p1928_p12), %s467_s21, 128  }
  0x44   : > { %1728 = vsyncadd (%p1928_p12), %s467_s21, 4294967168 }
  0x45   : > { %1730 = dma.done.wait (%p53_p1), [#allocation6], 6192  }
  0x46   : > { %1732 = vsyncadd (%p53_p1), [#allocation6], 4294961104 }
  0x47   : > { %1734 = dma.done.wait (%p53_p1), [#allocation9], 6144  }
  0x48   : > { %1736 = vsyncadd (%p53_p1), [#allocation9], 4294961152 }
  0x49   : > { %1738 = dma.done.wait (%p53_p1), [#allocation12], 4096  }
  0x4a   : > { %1740 = vsyncadd (%p53_p1), [#allocation12], 4294963200  ;;  %v586_v0 = vld [vmem:[#allocation5 + $0x170] sm:$0xff]  ;;  %v587_v1 = vld [vmem:[#allocation5 + $0x178] sm:$0xff]  ;;  %vm657_vm0 = vcmask 261120   ;;  %s1772_s7 = smov 96  }
  0x4b   : > { %v585_v2 = vld [vmem:[#allocation5 + $0x168] sm:$0xff]  ;;  %616 = vmatpush.msra.mxu1 %v586_v0  ;;  %636 = vmatpush.msra.mxu2 %v587_v1  ;;  %v583_v3 = vld [vmem:[#allocation5 + $0x158] sm:$0xff]  ;;  %v584_v4 = vld [vmem:[#allocation5 + $0x160] sm:$0xff]  ;;  %s1773_s16 = smov 64   ;;  %s1774_s22 = smov 32   ;;  %vm684_vm1 = vcmask 64512  }
  0x4c   : > { %v582_v5 = vld [vmem:[#allocation5 + $0x150] sm:$0xff]  ;;  %596 = vmatpush.msra.mxu0 %v585_v2  ;;  %v580_v6 = vld [vmem:[#allocation5 + $0x140] sm:$0xff]  ;;  %v581_v7 = vld [vmem:[#allocation5 + $0x148] sm:$0xff]  ;;  %vm928_vm2 = vcmask 523264   ;;  %vm930_vm3 = vcmask 785408   ;;  %s2132_s13 = sld [smem:[#allocation23_spill]] }
  0x4d   : > { %617 = vmatpush.msra.mxu1 %v583_v3  ;;  %637 = vmatpush.msra.mxu2 %v584_v4  ;;  %v579_v8 = vld [vmem:[#allocation5 + $0x138] sm:$0xff]  ;;  %v577_v9 = vld [vmem:[#allocation5 + $0x128] sm:$0xff]  ;;  %v578_v10 = vld [vmem:[#allocation5 + $0x130] sm:$0xff]  ;;  %s2133_s14 = sld [smem:[#allocation25_spill]] }
  0x4e   : > { %597 = vmatpush.msra.mxu0 %v582_v5  ;;  %v576_v11 = vld [vmem:[#allocation5 + $0x120] sm:$0xff]  ;;  %v574_v12 = vld [vmem:[#allocation5 + $0x110] sm:$0xff]  ;;  %v575_v13 = vld [vmem:[#allocation5 + $0x118] sm:$0xff]  ;;  %s2134_s3 = sld [smem:[#allocation24_spill]] }
  0x4f   : > { %618 = vmatpush.msra.mxu1 %v580_v6  ;;  %638 = vmatpush.msra.mxu2 %v581_v7  ;;  %v573_v14 = vld [vmem:[#allocation5 + $0x108] sm:$0xff]  ;;  %v571_v15 = vld [vmem:[#allocation5 + $0xf8] sm:$0xff]  ;;  %v572_v16 = vld [vmem:[#allocation5 + $0x100] sm:$0xff] }
  0x50   : > { %598 = vmatpush.msra.mxu0 %v579_v8  ;;  %v570_v17 = vld [vmem:[#allocation5 + $0xf0] sm:$0xff]  ;;  %v568_v18 = vld [vmem:[#allocation5 + $0xe0] sm:$0xff]  ;;  %v569_v19 = vld [vmem:[#allocation5 + $0xe8] sm:$0xff] }
  0x51   : > { %619 = vmatpush.msra.mxu1 %v577_v9  ;;  %639 = vmatpush.msra.mxu2 %v578_v10  ;;  %v567_v20 = vld [vmem:[#allocation5 + $0xd8] sm:$0xff]  ;;  %v565_v21 = vld [vmem:[#allocation5 + $0xc8] sm:$0xff]  ;;  %v566_v22 = vld [vmem:[#allocation5 + $0xd0] sm:$0xff] }
  0x52   : > { %599 = vmatpush.msra.mxu0 %v576_v11  ;;  %v564_v23 = vld [vmem:[#allocation5 + $0xc0] sm:$0xff]  ;;  %v562_v24 = vld [vmem:[#allocation5 + $0xb0] sm:$0xff]  ;;  %v563_v25 = vld [vmem:[#allocation5 + $0xb8] sm:$0xff] }
  0x53   : > { %620 = vmatpush.msra.mxu1 %v574_v12  ;;  %640 = vmatpush.msra.mxu2 %v575_v13  ;;  %v561_v26 = vld [vmem:[#allocation5 + $0xa8] sm:$0xff]  ;;  %v559_v27 = vld [vmem:[#allocation5 + $0x98] sm:$0xff]  ;;  %v560_v28 = vld [vmem:[#allocation5 + $0xa0] sm:$0xff]  ;;  %s1701_s30 = scalar_lea.hbm %s2133_s14, 16 }
  0x54   : > { %600 = vmatpush.msra.mxu0 %v573_v14  ;;  %v558_v29 = vld [vmem:[#allocation5 + $0x90] sm:$0xff]  ;;  %v556_v30 = vld [vmem:[#allocation5 + $0x80] sm:$0xff]  ;;  %v557_v31 = vld [vmem:[#allocation5 + $0x88] sm:$0xff] }
  0x55   : > { %621 = vmatpush.msra.mxu1 %v571_v15  ;;  %641 = vmatpush.msra.mxu2 %v572_v16  ;;  %v555_v32 = vld [vmem:[#allocation5 + $0x78] sm:$0xff]  ;;  %v553_v33 = vld [vmem:[#allocation5 + $0x68] sm:$0xff]  ;;  %v554_v34 = vld [vmem:[#allocation5 + $0x70] sm:$0xff] }
  0x56   : > { %601 = vmatpush.msra.mxu0 %v570_v17  ;;  %v552_v35 = vld [vmem:[#allocation5 + $0x60] sm:$0xff]  ;;  %v550_v36 = vld [vmem:[#allocation5 + $0x50] sm:$0xff]  ;;  %v551_v37 = vld [vmem:[#allocation5 + $0x58] sm:$0xff] }
  0x57   : > { %622 = vmatpush.msra.mxu1 %v568_v18  ;;  %642 = vmatpush.msra.mxu2 %v569_v19  ;;  %v549_v38 = vld [vmem:[#allocation5 + $0x48] sm:$0xff]  ;;  %v547_v39 = vld [vmem:[#allocation5 + $0x38] sm:$0xff]  ;;  %v548_v40 = vld [vmem:[#allocation5 + $0x40] sm:$0xff] }
  0x58   : > { %602 = vmatpush.msra.mxu0 %v567_v20  ;;  %v546_v41 = vld [vmem:[#allocation5 + $0x30] sm:$0xff]  ;;  %v544_v42 = vld [vmem:[#allocation5 + $0x20] sm:$0xff]  ;;  %v545_v43 = vld [vmem:[#allocation5 + $0x28] sm:$0xff] }
  0x59   : > { %623 = vmatpush.msra.mxu1 %v565_v21  ;;  %643 = vmatpush.msra.mxu2 %v566_v22  ;;  %v543_v44 = vld [vmem:[#allocation5 + $0x18] sm:$0xff]  ;;  %v541_v45 = vld [vmem:[#allocation5 + $0x8] sm:$0xff]  ;;  %v542_v46 = vld [vmem:[#allocation5 + $0x10] sm:$0xff] }
  0x5a   : > { %603 = vmatpush.msra.mxu0 %v564_v23  ;;  %v540_v47 = vld [vmem:[#allocation5] sm:$0xff]  ;;  %v1988_v48 = vld [vmem:[%s1969_s2] sm:$0xff] }
  0x5b   : > { %624 = vmatpush.msra.mxu1 %v562_v24  ;;  %644 = vmatpush.msra.mxu2 %v563_v25  ;;  %v588_v49 = vld [vmem:[#allocation7] sm:$0x7] }
  0x5c   : > { %604 = vmatpush.msra.mxu0 %v561_v26  ;;  %v591_v50 = vperm.slane %v588_v49, 1  ;;  %v590_v51 = vperm.slane %v588_v49, 0  ;;  %v592_v57 = vperm.slane %v588_v49, 2  ;;  %v945_v49 = vld [vmem:[#allocation8 + $0x68] sm:$0xff] }
  0x5d   : > { %625 = vmatpush.msra.mxu1 %v559_v27  ;;  %645 = vmatpush.msra.mxu2 %v560_v28 }
  0x5e   : > { %605 = vmatpush.msra.mxu0 %v558_v29 }
  0x5f   : > { %626 = vmatpush.msra.mxu1 %v556_v30  ;;  %646 = vmatpush.msra.mxu2 %v557_v31 }
  0x60   : > { %606 = vmatpush.msra.mxu0 %v555_v32 }
  0x61   : > { %627 = vmatpush.msra.mxu1 %v553_v33  ;;  %647 = vmatpush.msra.mxu2 %v554_v34 }
  0x62   : > { %607 = vmatpush.msra.mxu0 %v552_v35 }
  0x63   : > { %628 = vmatpush.msra.mxu1 %v550_v36  ;;  %648 = vmatpush.msra.mxu2 %v551_v37 }
  0x64   : > { %608 = vmatpush.msra.mxu0 %v549_v38 }
  0x65   : > { %629 = vmatpush.msra.mxu1 %v547_v39  ;;  %649 = vmatpush.msra.mxu2 %v548_v40 }
  0x66   : > { %609 = vmatpush.msra.mxu0 %v546_v41 }
  0x67   : > { %630 = vmatpush.msra.mxu1 %v544_v42  ;;  %650 = vmatpush.msra.mxu2 %v545_v43 }
  0x68   : > { %610 = vmatpush.msra.mxu0 %v543_v44 }
  0x69   : > { %631 = vmatpush.msra.mxu1 %v541_v45  ;;  %651 = vmatpush.msra.mxu2 %v542_v46  ;;  %v947_v46 = vld [vmem:[#allocation8 + $0x78] sm:$0xff] }
  0x6a   : > { %611 = vmatpush.msra.mxu0 %v540_v47  ;;  %632 = vmatmul.f32.vlgmr.msra.gmra.mxu1 %v1988_v48  ;;  %v946_v47 = vld [vmem:[#allocation8 + $0x70] sm:$0xff] }
  0x6b   : > { %652 = vmatmul.f32.vlgmr.msra.gmra.mxu2 %v1988_v48  ;;  %612 = vmatmul.f32.vlgmr.msra.gmra.mxu0 %v1988_v48 }
  0xe7   : > { %v633_v52 = vpop.f32.mrf.mxu1 }
  0xe8   : > { %v634_v53 = vadd.f32 %v633_v52, %v591_v50  ;;  %v613_v54 = vpop.f32.mrf.mxu0  ;;  %v944_v50 = vld [vmem:[#allocation8 + $0x60] sm:$0xff]  ;;  %v942_v52 = vld [vmem:[#allocation8 + $0x50] sm:$0xff] }
  0xe9   : > { %v614_v55 = vadd.f32 %v613_v54, %v590_v51  ;;  %v943_v51 = vld [vmem:[#allocation8 + $0x58] sm:$0xff]  ;;  %v940_v54 = vld [vmem:[#allocation8 + $0x40] sm:$0xff] }
  0xea   : > { %721 = vrot.lane.b32.xlu0 %v634_v53, %s1772_s7  ;;  %1350 = vmatpush.xpose.msk.msrb.mxu0 %vm657_vm0, %v634_v53 }
  0xeb   : > { %v656_v56 = vmul.f32 0.17677669, %v614_v55  ;;  %v939_v55 = vld [vmem:[#allocation8 + $0x38] sm:$0xff] }
  0xed   : > { %1351 = vmatmul.msk.f32.vlgmr.msrb.gmra.mxu0 %vm657_vm0, %v656_v56 }
  0xee   : > { %v653_v58 = vpop.f32.mrf.mxu2 }
  0xef   : > { %v1996_v59 = vadd.f32 %v653_v58, %v592_v57  ;;  %v937_v57 = vld [vmem:[#allocation8 + $0x28] sm:$0xff] }
  0xf1   : > { %759 = vrot.lane.b32.xlu2 %v1996_v59, %s1772_s7  ;;  %714 = vmatpush.msrb.mxu2 %v1996_v59 }
  0xf2   : > { %719 = vrot.lane.b32.xlu0 %v656_v56, %s1772_s7 }
  0xf9   : > { %787 = vrot.lane.b32.xlu2 %v634_v53, %s1773_s16 }
  0xfa   : > { %852 = vrot.lane.b32.xlu0 %v634_v53, %s1774_s22  ;;  %v941_v53 = vld [vmem:[#allocation8 + $0x48] sm:$0xff] }
 0x101   : > { %850 = vrot.lane.b32.xlu2 %v656_v56, %s1774_s22 }
 0x14b   : > { %v760_v60 = vpop.permute.xlu2 %759 }
 0x14c   : > { %780 = vmatpush.msra.mxu3 %v760_v60 }
 0x153   : > { %v788_v61 = vpop.permute.xlu2 %787 }
 0x154   : > { %1356 = vmatpush.xpose.msk.msrb.mxu3 %vm657_vm0, %v788_v61  ;;  %v936_v61 = vld [vmem:[#allocation8 + $0x20] sm:$0xff] }
 0x15b   : > { %v851_v3 = vpop.permute.xlu2 %850 }
 0x15c   : > { %v722_v62 = vpop.permute.xlu0 %721 }
 0x15d   : > { %1353 = vmatpush.xpose.msk.msrb.mxu1 %vm657_vm0, %v722_v62  ;;  %v935_v62 = vld [vmem:[#allocation8 + $0x18] sm:$0xff] }
 0x164   : > { %v720_v63 = vpop.permute.xlu0 %719 }
 0x165   : > { %1354 = vmatmul.msk.f32.vlgmr.msrb.gmra.mxu1 %vm657_vm0, %v720_v63  ;;  %v934_v63 = vld [vmem:[#allocation8 + $0x10] sm:$0xff] }
 0x16a   : > { %v681_v0 = vpop.f32.mrf.mxu0 }
 0x16b   : > { %v685_v1 = vsel %vm684_vm1, %v681_v0, -inf }
 0x16c   : > { %v853_v2 = vpop.permute.xlu0 %852  ;;  %686 = vmax.xlane.f32.xlu0 %v685_v1  ;;  %v932_v1 = vld [vmem:[#allocation8] sm:$0xff] }
 0x16d   : > { %1359 = vmatpush.xpose.msk.msra.mxu1 %vm657_vm0, %v853_v2 }
 0x170   : > { %1360 = vmatmul.msk.f32.vlgmr.msra.gmra.mxu1 %vm657_vm0, %v851_v3 }
 0x1df   : > { %v687_v4 = vpop.xlane.xlu0 %686 }
 0x1e0   : > { %v688_v7 = vsub.f32 %v681_v0, %v687_v4  ;;  %v933_v0 = vld [vmem:[#allocation8 + $0x8] sm:$0xff] }
 0x1e2   : > { %v744_v5 = vpop.f32.mrf.mxu1  ;;  %v689_v8 = vmul.f32 1.442695, %v688_v7 }
 0x1e3   : > { %v747_v6 = vsel %vm684_vm1, %v744_v5, -inf }
 0x1e4   : > { %748 = vmax.xlane.f32.xlu1 %v747_v6  ;;  %1479 = vpow2.f32 %v689_v8  ;;  %v1473_v8 = vld [vmem:[%s2104_s4] ss:$0 sm:$0xff] }
 0x1ea   : > { %v1480_v11 = vpop.eup %1479 }
 0x1eb   : > { %v691_v12 = vsel %vm684_vm1, %v1480_v11, 0.0 }
 0x1ed   : > { %v875_v9 = vpop.f32.mrf.mxu1 }
 0x1ee   : > { %v878_v10 = vsel %vm684_vm1, %v875_v9, -inf }
 0x1ef   : > { %879 = vmax.xlane.f32.xlu2 %v878_v10 }
 0x1f7   : > { %692 = vadd.xlane.f32.xlu2 %v691_v12  ;;  %v1775_v12 = vmov 128.0  }
 0x257   : > { %v749_v13 = vpop.xlane.xlu1 %748 }
 0x258   : > { %v750_v14 = vsub.f32 %v744_v5, %v749_v13  ;;  %v1040_v13 = vld [vmem:[#allocation10 + $0xf0] sm:$0xff] }
 0x25a   : > { %v751_v15 = vmul.f32 1.442695, %v750_v14  ;;  %v1041_v14 = vld [vmem:[#allocation10 + $0xf8] sm:$0xff] }
 0x25b   : > { %1068 = vmatpush.msrb.mxu1 %v1041_v14  ;;  %v1096_v14 = vld [vmem:[#allocation11 + $0x30] sm:$0xff] }
 0x25c   : > { %1481 = vpow2.f32 %v751_v15  ;;  %v1038_v15 = vld [vmem:[#allocation10 + $0xe0] sm:$0xff] }
 0x262   : > { %v1482_v16 = vpop.eup %1481  ;;  %v880_v17 = vpop.xlane.xlu2 %879 }
 0x263   : > { %v881_v18 = vsub.f32 %v875_v9, %v880_v17  ;;  %v753_v19 = vsel %vm684_vm1, %v1482_v16, 0.0 }
 0x264   : > { %754 = vadd.xlane.f32.xlu1 %v753_v19 }
 0x265   : > { %v882_v20 = vmul.f32 1.442695, %v881_v18 }
 0x267   : > { %1483 = vpow2.f32 %v882_v20 }
 0x26a   : > { %v693_v21 = vpop.xlane.xlu2 %692 }
 0x26b   : > { %1485 = vrcp.f32 %v693_v21 }
 0x26d   : > { %v1484_v22 = vpop.eup %1483 }
 0x26e   : > { %v884_v23 = vsel %vm684_vm1, %v1484_v22, 0.0 }
 0x26f   : > { %885 = vadd.xlane.f32.xlu0 %v884_v23 }
 0x271   : > { %v1486_v24 = vpop.eup %1485 }
 0x272   : > { %v695_v25 = vmul.f32 %v1486_v24, %v1480_v11 }
 0x274   : > { %1352 = vmatmul.msk.f32.vlgmr.msrb.gmra.mxu2 %vm684_vm1, %v695_v25 }
 0x27d   : > { %785 = vrot.lane.b32.xlu1 %v656_v56, %s1773_s16  ;;  %v938_v56 = vld [vmem:[#allocation8 + $0x30] sm:$0xff] }
 0x283   : > { %889 = vrot.lane.b32.xlu0 %v1996_v59, %s1774_s22 }
 0x2d7   : > { %v755_v26 = vpop.xlane.xlu1 %754 }
 0x2d8   : > { %1487 = vrcp.f32 %v755_v26  ;;  %v1036_v26 = vld [vmem:[#allocation10 + $0xd0] sm:$0xff] }
 0x2de   : > { %v1488_v27 = vpop.eup %1487 }
 0x2df   : > { %v757_v28 = vmul.f32 %v1488_v27, %v1482_v16  ;;  %v1039_v16 = vld [vmem:[#allocation10 + $0xe8] sm:$0xff]  ;;  %v1037_v27 = vld [vmem:[#allocation10 + $0xd8] sm:$0xff] }
 0x2e0   : > { %1069 = vmatpush.msrb.mxu1 %v1039_v16 }
 0x2e1   : > { %1355 = vmatmul.msk.f32.vlgmr.msra.gmra.mxu3 %vm684_vm1, %v757_v28  ;;  %v1034_v28 = vld [vmem:[#allocation10 + $0xc0] sm:$0xff] }
 0x2e2   : > { %v886_v29 = vpop.xlane.xlu0 %885  ;;  %952 = vmatpush.msra.mxu3 %v947_v46  ;;  %1070 = vmatpush.msrb.mxu1 %v1037_v27  ;;  %v1016_v46 = vld [vmem:[#allocation10 + $0x30] sm:$0xff]  ;;  %v1474_v27 = vld [vmem:[%s2105_s5] ss:$0 sm:$0xff] }
 0x2e3   : > { %1489 = vrcp.f32 %v886_v29  ;;  %v1035_v29 = vld [vmem:[#allocation10 + $0xc8] sm:$0xff] }
 0x2e4   : > { %953 = vmatpush.msra.mxu3 %v946_v47  ;;  %1071 = vmatpush.msrb.mxu1 %v1035_v29  ;;  %v1017_v47 = vld [vmem:[#allocation10 + $0x38] sm:$0xff] }
 0x2e6   : > { %954 = vmatpush.msra.mxu3 %v945_v49  ;;  %v1014_v49 = vld [vmem:[#allocation10 + $0x20] sm:$0xff] }
 0x2e8   : > { %955 = vmatpush.msra.mxu3 %v944_v50  ;;  %v1015_v50 = vld [vmem:[#allocation10 + $0x28] sm:$0xff] }
 0x2e9   : > { %v1490_v31 = vpop.eup %1489 }
 0x2ea   : > { %v888_v32 = vmul.f32 %v1490_v31, %v1484_v22  ;;  %956 = vmatpush.msra.mxu3 %v943_v51  ;;  %v1033_v31 = vld [vmem:[#allocation10 + $0xb8] sm:$0xff]  ;;  %v1012_v51 = vld [vmem:[#allocation10 + $0x10] sm:$0xff] }
 0x2eb   : > { %1072 = vmatpush.msrb.mxu1 %v1033_v31 }
 0x2ec   : > { %957 = vmatpush.msra.mxu3 %v942_v52  ;;  %v1013_v52 = vld [vmem:[#allocation10 + $0x18] sm:$0xff] }
 0x2ee   : > { %958 = vmatpush.msra.mxu3 %v941_v53  ;;  %v1010_v53 = vld [vmem:[#allocation10] sm:$0xff] }
 0x2ef   : > { %v786_v30 = vpop.permute.xlu1 %785 }
 0x2f0   : > { %1357 = vmatmul.msk.f32.vlgmr.msrb.gmra.mxu3 %vm657_vm0, %v786_v30  ;;  %v1032_v30 = vld [vmem:[#allocation10 + $0xb0] sm:$0xff] }
 0x2f1   : > { %959 = vmatpush.msra.mxu3 %v940_v54  ;;  %v1011_v54 = vld [vmem:[#allocation10 + $0x8] sm:$0xff] }
 0x2f3   : > { %960 = vmatpush.msra.mxu3 %v939_v55  ;;  %v1105_v55 = vld [vmem:[#allocation11 + $0x78] sm:$0xff] }
 0x2f5   : > { %v890_v33 = vpop.permute.xlu0 %889  ;;  %961 = vmatpush.msra.mxu3 %v938_v56  ;;  %v1121_v56 = vld [vmem:[#allocation11 + $0xf8] sm:$0xff] }
 0x2f6   : > { %910 = vmatpush.msra.mxu2 %v890_v33  ;;  %v1031_v33 = vld [vmem:[#allocation10 + $0xa8] sm:$0xff] }
 0x2f7   : > { %1361 = vmatmul.msk.f32.vlgmr.msra.gmra.mxu2 %vm684_vm1, %v888_v32  ;;  %962 = vmatpush.msra.mxu3 %v937_v57  ;;  %v716_v58 = vpop.f32.mrf.mxu2  ;;  %v1030_v32 = vld [vmem:[#allocation10 + $0xa0] sm:$0xff]  ;;  %v1104_v57 = vld [vmem:[#allocation11 + $0x70] sm:$0xff] }
 0x2f8   : > { %1073 = vmatpush.msrb.mxu1 %v1031_v33  ;;  %1126 = vmatpush.msrb.mxu2 %v1105_v55  ;;  %v1092_v33 = vld [vmem:[#allocation11 + $0x10] sm:$0xff] }
 0x2f9   : > { %963 = vmatpush.msra.mxu3 %v936_v61 }
 0x2fa   : > { %1127 = vmatpush.msrb.mxu2 %v1104_v57 }
 0x2fb   : > { %964 = vmatpush.msra.mxu3 %v935_v62 }
 0x2fd   : > { %965 = vmatpush.msra.mxu3 %v934_v63  ;;  %v1102_v63 = vld [vmem:[#allocation11 + $0x60] sm:$0xff] }
 0x2ff   : > { %966 = vmatpush.msra.mxu3 %v933_v0  ;;  %v1118_v0 = vld [vmem:[#allocation11 + $0xe0] sm:$0xff] }
 0x301   : > { %967 = vmatpush.msra.mxu3 %v932_v1 }
 0x303   : > { %1146 = vmatpush.msrb.mxu3 %v1121_v56 }
 0x364   : > { %v782_v34 = vpop.f32.mrf.mxu3 }
 0x373   : > { %v810_v35 = vpop.f32.mrf.mxu3 }
 0x374   : > { %v813_v36 = vsel %vm684_vm1, %v810_v35, -inf }
 0x375   : > { %814 = vmax.xlane.f32.xlu1 %v813_v36  ;;  %v1026_v36 = vld [vmem:[#allocation10 + $0x80] sm:$0xff] }
 0x37a   : > { %v912_v60 = vpop.f32.mrf.mxu2 }
 0x38e   : > { %916 = vrot.lane.b32.xlu1 %v782_v34, %s1774_s22  ;;  %v1028_v34 = vld [vmem:[#allocation10 + $0x90] sm:$0xff] }
 0x3e8   : > { %v815_v37 = vpop.xlane.xlu1 %814 }
 0x3e9   : > { %v816_v38 = vsub.f32 %v810_v35, %v815_v37  ;;  %v1029_v35 = vld [vmem:[#allocation10 + $0x98] sm:$0xff]  ;;  %v1027_v37 = vld [vmem:[#allocation10 + $0x88] sm:$0xff] }
 0x3ea   : > { %1074 = vmatpush.msrb.mxu1 %v1029_v35  ;;  %v1091_v35 = vld [vmem:[#allocation11 + $0x8] sm:$0xff] }
 0x3eb   : > { %v817_v39 = vmul.f32 1.442695, %v816_v38  ;;  %v1024_v38 = vld [vmem:[#allocation10 + $0x70] sm:$0xff] }
 0x3ec   : > { %1075 = vmatpush.msrb.mxu1 %v1027_v37  ;;  %v1090_v37 = vld [vmem:[#allocation11] sm:$0xff] }
 0x3ed   : > { %1491 = vpow2.f32 %v817_v39  ;;  %v1025_v39 = vld [vmem:[#allocation10 + $0x78] sm:$0xff] }
 0x3ee   : > { %1076 = vmatpush.msrb.mxu1 %v1025_v39 }
 0x3f3   : > { %v1492_v40 = vpop.eup %1491 }
 0x3f4   : > { %v819_v41 = vsel %vm684_vm1, %v1492_v40, 0.0 }
 0x3f5   : > { %820 = vadd.xlane.f32.xlu2 %v819_v41  ;;  %v1023_v41 = vld [vmem:[#allocation10 + $0x68] sm:$0xff] }
 0x3f6   : > { %1077 = vmatpush.msrb.mxu1 %v1023_v41 }
 0x400   : > { %v917_v3 = vpop.permute.xlu1 %916 }
 0x401   : > { %v927_v4 = vsel %vm657_vm0, %v716_v58, %v917_v3  ;;  %v1120_v58 = vld [vmem:[#allocation11 + $0xf0] sm:$0xff]  ;;  %v1117_v3 = vld [vmem:[#allocation11 + $0xd8] sm:$0xff] }
 0x402   : > { %1147 = vmatpush.msrb.mxu3 %v1120_v58 }
 0x40d   : > { %824 = vrot.lane.b32.xlu2 %v1996_v59, %s1773_s16 }
 0x468   : > { %v821_v42 = vpop.xlane.xlu2 %820 }
 0x469   : > { %1493 = vrcp.f32 %v821_v42  ;;  %v1020_v42 = vld [vmem:[#allocation10 + $0x50] sm:$0xff] }
 0x46a   : > { %1495 = vrcp.f32 %v1775_v12  ;;  %v1113_v12 = vld [vmem:[#allocation11 + $0xb8] sm:$0xff] }
 0x46f   : > { %v1494_v43 = vpop.eup %1493 }
 0x470   : > { %v823_v44 = vmul.f32 %v1494_v43, %v1492_v40  ;;  %v825_v45 = vpop.permute.xlu2 %824  ;;  %v1496_v17 = vpop.eup %1495  ;;  %v1022_v40 = vld [vmem:[#allocation10 + $0x60] sm:$0xff]  ;;  %v1021_v43 = vld [vmem:[#allocation10 + $0x58] sm:$0xff] }
 0x471   : > { %845 = vmatpush.msra.mxu0 %v825_v45  ;;  %v978_v18 = vmul.f32 128.0, %v1496_v17  ;;  %vm982_vm4 = vweird.f32 %v1496_v17  ;;  %1078 = vmatpush.msrb.mxu1 %v1021_v43  ;;  %v1019_v45 = vld [vmem:[#allocation10 + $0x48] sm:$0xff] }
 0x472   : > { %1358 = vmatmul.msk.f32.vlgmr.msra.gmra.mxu0 %vm684_vm1, %v823_v44  ;;  %v1018_v44 = vld [vmem:[#allocation10 + $0x40] sm:$0xff] }
 0x473   : > { %1048 = vmatpush.msrb.mxu0 %v1040_v13  ;;  %v979_v19 = vsub.f32 1.0, %v978_v18  ;;  %1079 = vmatpush.msrb.mxu1 %v1019_v45  ;;  %v1111_v18 = vld [vmem:[#allocation11 + $0xa8] sm:$0xff] }
 0x475   : > { %1049 = vmatpush.msrb.mxu0 %v1038_v15  ;;  %v980_v20 = vmul.f32 %v1496_v17, %v979_v19  ;;  %1080 = vmatpush.msrb.mxu1 %v1017_v47  ;;  %v1112_v15 = vld [vmem:[#allocation11 + $0xb0] sm:$0xff]  ;;  %v1476_v47 = vld [vmem:[%s2110_s10] ss:$0 sm:$0xff] }
 0x477   : > { %v981_v21 = vadd.f32 %v1496_v17, %v980_v20  ;;  %1050 = vmatpush.msrb.mxu0 %v1036_v26  ;;  %1081 = vmatpush.msrb.mxu1 %v1015_v50  ;;  %v1094_v20 = vld [vmem:[#allocation11 + $0x20] sm:$0xff] }
 0x479   : > { %v2036_v22 = vsel %vm982_vm4, %v1496_v17, %v981_v21  ;;  %1051 = vmatpush.msrb.mxu0 %v1034_v28  ;;  %1082 = vmatpush.msrb.mxu1 %v1013_v52  ;;  %v1095_v17 = vld [vmem:[#allocation11 + $0x28] sm:$0xff]  ;;  %v1110_v21 = vld [vmem:[#allocation11 + $0xa0] sm:$0xff] }
 0x47b   : > { %1052 = vmatpush.msrb.mxu0 %v1032_v30  ;;  %1083 = vmatpush.msrb.mxu1 %v1011_v54  ;;  %v1475_v30 = vld [vmem:[%s2106_s6] ss:$0 sm:$0xff] }
 0x47d   : > { %1053 = vmatpush.msrb.mxu0 %v1030_v32 }
 0x47f   : > { %1054 = vmatpush.msrb.mxu0 %v1028_v34  ;;  %v1108_v34 = vld [vmem:[#allocation11 + $0x90] sm:$0xff] }
 0x481   : > { %1055 = vmatpush.msrb.mxu0 %v1026_v36  ;;  %v1107_v36 = vld [vmem:[#allocation11 + $0x88] sm:$0xff] }
 0x483   : > { %1056 = vmatpush.msrb.mxu0 %v1024_v38  ;;  %v1106_v38 = vld [vmem:[#allocation11 + $0x80] sm:$0xff] }
 0x485   : > { %1057 = vmatpush.msrb.mxu0 %v1022_v40 }
 0x487   : > { %1058 = vmatpush.msrb.mxu0 %v1020_v42 }
 0x489   : > { %1059 = vmatpush.msrb.mxu0 %v1018_v44 }
 0x48b   : > { %1060 = vmatpush.msrb.mxu0 %v1016_v46 }
 0x48d   : > { %1061 = vmatpush.msrb.mxu0 %v1014_v49 }
 0x48f   : > { %1062 = vmatpush.msrb.mxu0 %v1012_v51 }
 0x491   : > { %1063 = vmatpush.msrb.mxu0 %v1010_v53 }
 0x4ef   : > { %v847_v59 = vpop.f32.mrf.mxu0 }
 0x4f0   : > { %920 = vrot.lane.b32.xlu0 %v847_v59, %s1773_s16  ;;  %v1103_v59 = vld [vmem:[#allocation11 + $0x68] sm:$0xff]  ;;  %s1199_s16 = scalar_lea.sflag [#allocation4], %s1963_s19 }
 0x4f1   : > { %1128 = vmatpush.msrb.mxu2 %v1103_v59 }
 0x4f3   : > { %1129 = vmatpush.msrb.mxu2 %v1102_v63 }
 0x4f8   : > { %924 = vrot.lane.b32.xlu0 %v912_v60, %s1772_s7  ;;  %v1119_v60 = vld [vmem:[#allocation11 + $0xe8] sm:$0xff]  ;;  %s1363_s7 = sshll.u32 %s1870_s15, 3  ;;  %s538_s15 = scalar_lea.vmem [#allocation13], %s1343_s29 }
 0x4f9   : > { %1148 = vmatpush.msrb.mxu3 %v1119_v60  ;;  %s1209_s11 = scalar_lea.hbm %s2133_s14, %s1363_s7  ;;  %s1211_s21 = sshll.u32 %s538_s15, 4  ;;  %s1212_s21 = int_to_ptr.vmem [resolvable:$true] %s1211_s21 }
 0x4fa   : > { %s1213_s2 = sshll.u32 %s1209_s11, 4  ;;  %s1214_s2 = int_to_ptr.hbm [resolvable:$true] %s1213_s2 }
 0x4fb   : > { %1149 = vmatpush.msrb.mxu3 %v1118_v0  ;;  %s1695_s22 = sshra.s32 %s1214_s2, 4  ;;  %s1696_s22 = int_to_ptr.hbm [resolvable:$true] %s1695_s22 }
 0x4fc   : > { %s1697_s7 = scalar_lea.hbm %s1696_s22, 8  ;;  %p1702_p12 = scmp.lt.s32.totalorder %s1696_s22, %s2133_s14 }
 0x4fd   : > { %1150 = vmatpush.msrb.mxu3 %v1117_v3  ;;  %v1477_v3 = vld [vmem:[%s2132_s13] ss:$0 sm:$0xff]  ;;  %p1698_p1 = scmp.ne.s32.totalorder %s1696_s22, %s1697_s7  ;;  %p1703_p8 = scmp.lt.s32.totalorder %s1701_s30, %s1697_s7 }
 0x4ff   : > { %p1699_p3 = pnand %p1698_p1, %p1932_p13  ;;  %p1704_p7 = por %p1703_p8, %p1702_p12 }
 0x501   : > { %p1700_p5 = pneg %p1699_p3 }
 0x503   : > { %p1705_p9 = pnand %p1704_p7, %p1700_p5 }
 0x562   : > { %v921_v2 = vpop.permute.xlu0 %920 }
 0x563   : > { %v929_v5 = vsel %vm928_vm2, %v927_v4, %v921_v2  ;;  %v1101_v2 = vld [vmem:[#allocation11 + $0x58] sm:$0xff]  ;;  %v1100_v4 = vld [vmem:[#allocation11 + $0x50] sm:$0xff] }
 0x564   : > { %1130 = vmatpush.msrb.mxu2 %v1101_v2 }
 0x566   : > { %1131 = vmatpush.msrb.mxu2 %v1100_v4 }
 0x56a   : > { %v925_v6 = vpop.permute.xlu0 %924 }
 0x56b   : > { %v931_v7 = vsel %vm930_vm3, %v929_v5, %v925_v6  ;;  %v1116_v5 = vld [vmem:[#allocation11 + $0xd0] sm:$0xff]  ;;  %v1099_v6 = vld [vmem:[#allocation11 + $0x48] sm:$0xff] }
 0x56c   : > { %968 = vmatmul.f32.vlgmr.msra.gmra.mxu3 %v931_v7  ;;  %v1115_v7 = vld [vmem:[#allocation11 + $0xc8] sm:$0xff]  ;;  %1132 = vmatpush.msrb.mxu2 %v1099_v6 }
 0x56d   : > { %1151 = vmatpush.msrb.mxu3 %v1116_v5  ;;  %v1478_v5 = vld [vmem:[%s2134_s3] ss:$0 sm:$0xff] }
 0x56f   : > { %1152 = vmatpush.msrb.mxu3 %v1115_v7 }
 0x5ef   : > { %v969_v9 = vpop.f32.mrf.mxu3 }
 0x5f0   : > { %v970_v10 = vadd.f32 %v1473_v8, %v969_v9  ;;  %v1098_v8 = vld [vmem:[#allocation11 + $0x40] sm:$0xff] }
 0x5f1   : > { %v1114_v9 = vld [vmem:[#allocation11 + $0xc0] sm:$0xff]  ;;  %1133 = vmatpush.msrb.mxu2 %v1098_v8 }
 0x5f2   : > { %v972_v11 = vadd.f32 %v970_v10, %v1988_v48  ;;  %1153 = vmatpush.msrb.mxu3 %v1114_v9 }
 0x5f4   : > { %975 = vadd.xlane.f32.xlu2 %v972_v11  ;;  %1154 = vmatpush.msrb.mxu3 %v1113_v12 }
 0x5f6   : > { %1155 = vmatpush.msrb.mxu3 %v1112_v15 }
 0x5f8   : > { %1156 = vmatpush.msrb.mxu3 %v1111_v18 }
 0x5fa   : > { %1157 = vmatpush.msrb.mxu3 %v1110_v21 }
 0x667   : > { %v976_v48 = vpop.xlane.xlu2 %975 }
 0x668   : > { %v984_v23 = vmul.f32 %v2036_v22, %v976_v48 }
 0x66a   : > { %v2039_v24 = vsub.f32 %v972_v11, %v984_v23  ;;  %v1097_v11 = vld [vmem:[#allocation11 + $0x38] sm:$0xff] }
 0x66b   : > { %1134 = vmatpush.msrb.mxu2 %v1097_v11  ;;  %v1093_v23 = vld [vmem:[#allocation11 + $0x18] sm:$0xff] }
 0x66c   : > { %v986_v25 = vmul.f32 %v2039_v24, %v2039_v24 }
 0x66d   : > { %1135 = vmatpush.msrb.mxu2 %v1096_v14 }
 0x66e   : > { %987 = vadd.xlane.f32.xlu1 %v986_v25  ;;  %v1109_v25 = vld [vmem:[#allocation11 + $0x98] sm:$0xff] }
 0x66f   : > { %1136 = vmatpush.msrb.mxu2 %v1095_v17  ;;  %1158 = vmatpush.msrb.mxu3 %v1109_v25 }
 0x671   : > { %1137 = vmatpush.msrb.mxu2 %v1094_v20  ;;  %1159 = vmatpush.msrb.mxu3 %v1108_v34 }
 0x673   : > { %1138 = vmatpush.msrb.mxu2 %v1093_v23  ;;  %1160 = vmatpush.msrb.mxu3 %v1107_v36 }
 0x675   : > { %1139 = vmatpush.msrb.mxu2 %v1092_v33  ;;  %1161 = vmatpush.msrb.mxu3 %v1106_v38 }
 0x677   : > { %1140 = vmatpush.msrb.mxu2 %v1091_v35 }
 0x679   : > { %1141 = vmatpush.msrb.mxu2 %v1090_v37 }
 0x6e1   : > { %v988_v61 = vpop.xlane.xlu1 %987 }
 0x6e2   : > { %v989_v62 = vmul.f32 %v988_v61, %v2036_v22 }
 0x6e4   : > { %v990_v1 = vadd.f32 1e-05, %v989_v62 }
 0x6e6   : > { %1497 = vrsqrt.f32 %v990_v1  ;;  %vm997_vm6 = vweird.f32 %v990_v1 }
 0x6ec   : > { %v1498_v10 = vpop.eup %1497 }
 0x6ed   : > { %v992_v13 = vmul.f32 %v1498_v10, %v990_v1  ;;  %vm998_vm5 = vweird.f32 %v1498_v10 }
 0x6ee   : > { %vm999_vm7 = vmor %vm997_vm6, %vm998_vm5 }
 0x6ef   : > { %v993_v16 = vmul.f32 %v1498_v10, %v992_v13 }
 0x6f1   : > { %v994_v19 = vmul.f32 0.5, %v993_v16 }
 0x6f3   : > { %v995_v48 = vsub.f32 1.5, %v994_v19 }
 0x6f5   : > { %v996_v26 = vmul.f32 %v1498_v10, %v995_v48 }
 0x6f7   : > { %v1000_v28 = vsel %vm999_vm7, %v1498_v10, %v996_v26 }
 0x6f8   : > { %v1001_v29 = vmul.f32 %v1000_v28, %v2039_v24  ;;  %v1042_v24 = vld [vmem:[%s2108_s8] sm:$0x3] }
 0x6f9   : > { %v1044_v39 = vperm.slane %v1042_v24, 0  ;;  %v1045_v40 = vperm.slane %v1042_v24, 1 }
 0x6fa   : > { %v1005_v31 = vmul.f32 %v1474_v27, %v1001_v29 }
 0x6fc   : > { %v1009_v32 = vadd.f32 %v1475_v30, %v1005_v31 }
 0x6fe   : > { %1064 = vmatmul.f32.vlgmr.msrb.gmra.mxu0 %v1009_v32  ;;  %1084 = vmatmul.f32.vlgmr.msrb.gmra.mxu1 %v1009_v32 }
 0x77b   : > { %v1065_v41 = vpop.f32.mrf.mxu0  ;;  %v1085_v42 = vpop.f32.mrf.mxu1 }
 0x77c   : > { %v1066_v43 = vadd.f32 %v1065_v41, %v1044_v39  ;;  %v1086_v44 = vadd.f32 %v1085_v42, %v1045_v40 }
 0x77e   : > { %v1088_v45 = vmax.f32 %v1066_v43, 0.0  ;;  %v1089_v46 = vmax.f32 %v1086_v44, 0.0 }
 0x780   : > { %1142 = vmatmul.f32.vlgmr.msrb.gmra.mxu2 %v1088_v45  ;;  %1162 = vmatmul.f32.vlgmr.msrb.gmra.mxu3 %v1089_v46 }
 0x803   : > { %v1143_v49 = vpop.f32.mrf.mxu2  ;;  %v1163_v51 = vpop.f32.mrf.mxu3 }
 0x804   : > { %v1144_v50 = vadd.f32 %v1476_v47, %v1143_v49 }
 0x806   : > { %v1164_v52 = vadd.f32 %v1163_v51, %v1144_v50 }
 0x808   : > { %v1166_v53 = vadd.f32 %v1164_v52, %v1009_v32 }
 0x80a   : > { %1169 = vadd.xlane.f32.xlu0 %v1166_v53 }
 0x87d   : > { %v1170_v54 = vpop.xlane.xlu0 %1169 }
 0x87e   : > { %v1171_v55 = vmul.f32 %v1170_v54, %v2036_v22 }
 0x880   : > { %v1172_v56 = vsub.f32 %v1166_v53, %v1171_v55 }
 0x882   : > { %v1173_v57 = vmul.f32 %v1172_v56, %v1172_v56 }
 0x884   : > { %1174 = vadd.xlane.f32.xlu2 %v1173_v57 }
 0x8f7   : > { %v1175_v58 = vpop.xlane.xlu2 %1174 }
 0x8f8   : > { %v1176_v59 = vmul.f32 %v1175_v58, %v2036_v22 }
 0x8fa   : > { %v1177_v60 = vadd.f32 1e-05, %v1176_v59 }
 0x8fc   : > { %1499 = vrsqrt.f32 %v1177_v60  ;;  %vm1184_vm9 = vweird.f32 %v1177_v60 }
 0x902   : > { %v1500_v61 = vpop.eup %1499 }
 0x903   : > { %v1179_v62 = vmul.f32 %v1500_v61, %v1177_v60  ;;  %vm1185_vm8 = vweird.f32 %v1500_v61 }
 0x904   : > { %vm1186_vm10 = vmor %vm1184_vm9, %vm1185_vm8 }
 0x905   : > { %v1180_v63 = vmul.f32 %v1500_v61, %v1179_v62 }
 0x907   : > { %v1181_v0 = vmul.f32 0.5, %v1180_v63 }
 0x909   : > { %v1182_v1 = vsub.f32 1.5, %v1181_v0 }
 0x90b   : > { %v1183_v2 = vmul.f32 %v1500_v61, %v1182_v1 }
 0x90d   : > { %v1187_v22 = vsel %vm1186_vm10, %v1500_v61, %v1183_v2 }
 0x90e   : > { %v1188_v4 = vmul.f32 %v1187_v22, %v1172_v56 }
 0x910   : > { %v1192_v6 = vmul.f32 %v1477_v3, %v1188_v4 }
 0x912   : > { %v1196_v7 = vadd.f32 %v1478_v5, %v1192_v6 }
 0x914   : > { %1197 = vst [vmem:[%s538_s15] sm:$0xff] %v1196_v7 }
 0x915   : > { %1708 = shalt.err (!%p1705_p9)
}
 0x916   : > { %1388 = dma.vmem_to_hbm [thread:$0]  (%p1932_p13), %s1212_s21, 128, %s1214_s2, %s1199_s16  }
 0x917 PF: > { %s1225_s19 = sand.u32 1, %s1747_s25   ;;  %p2135_p10 = scmp.ge.s32.totalorder %s1759_s28, 2 }
 0x918   : > { %s1226_s11 = scalar_lea.sflag [#allocation4], %s1225_s19 }
 0x919   : > { %p1411_p11 = pnand %p2135_p10, %p1937_p4 }
 0x91b   : > { %p1412_p0 = pneg %p1411_p11 }
 0x91d   : > { %1742 = dma.done.wait (%p1412_p0), %s1226_s11, 128  }
 0x91e   : > { %1744 = vsyncadd (%p1412_p0), %s1226_s11, 4294967168  ;;  %p29_p2 = scmp.ge.s32.totalorder %s1912_s20, 4   ;;  %s2136_s25 = smov %s1751_s26 }
 0x91f   : > { %s2137_s26 = smov %s1755_s27  ;;  %s2138_s27 = smov %s1924_s18 }
 0x920   : > { %s2139_s28 = smov %s1912_s20  ;;  %31 = sbr.rel (!%p29_p2) target bundleno = 16 (0x10), region = 137 }
 0x925   :  { %1232 = vsyncpa [#allocation3], 1 }
 0x926   :  { %1234 = vsyncpa [#allocation3 + $0x1], 1 }
 0x927   :  { %1235 = vsyncpa [#allocation6], 1 }
 0x928   :  { %1236 = vsyncpa [#allocation9], 1 }
 0x929   :  { %1237 = vsyncpa [#allocation12], 1 }
 0x92a   :  { %1238 = vsyncpa [#allocation4], 1 }
 0x92b   :  { %1240 = vsyncpa [#allocation4 + $0x1], 1 }

</bundles_post_ra>
